<compile_context>
chip_gen: v7x
topology: tpu7x:2x2x1
jax: 0.10.0
libtpu: 0.0.40
codegen_flags: <defaults>
</compile_context>

<pallas_src>
import jax
import jax.numpy as jnp
from jax.experimental import pallas as pl
from jax.experimental.pallas import tpu as pltpu


def _cdiv(a, b):
    return -(-a // b)


def _round_up(x, m):
    return _cdiv(x, m) * m


def _pnn_kernel(d_ref, x_ref, mt_ref, w2_ref, b_ref, o_ref):
    """One node-column tile: o = M^T @ d + W2 @ x + b (f32 MXU accumulation).

    d_ref : [A, tn]   dists^T tile          (streamed, lane-dense)
    x_ref : [E, tn]   embeds^T tile         (streamed, lane-dense)
    mt_ref: [E, A]    M^T  (resident)
    w2_ref: [E, E]    W2   (resident)
    b_ref : [E, 1]    bias (resident, broadcast over lanes)
    o_ref : [E, tn]   out^T tile            (full-width stores)
    """
    acc = jnp.dot(mt_ref[...], d_ref[...], preferred_element_type=jnp.float32)
    acc = acc + jnp.dot(w2_ref[...], x_ref[...],
                        preferred_element_type=jnp.float32)
    o_ref[...] = (acc + b_ref[...]).astype(o_ref.dtype)


def pnn_layer_forward(embeds, anchor_set_id, dists_array, w_hidden, b_hidden,
                      *, node_tile=2048, compute_dtype=None,
                      transpose_output=True):
    """embeds: [N, E]; anchor_set_id: [A] int; dists_array: [N, A] or [A, N];
    w_hidden: [E, 2E] (nn.Linear weight); b_hidden: [E].

    Returns [N, E] (or [E, N] if transpose_output=False, for fused consumers
    that can take the lane-dense layout and skip the final transpose copy).
    compute_dtype: optional streaming dtype (e.g. jnp.bfloat16) for the big
    arrays; accumulation stays f32.
    """
    N, E = embeds.shape
    f32 = jnp.float32
    stream_dtype = f32 if compute_dtype is None else compute_dtype

    # dists orientation: PyTorch treats dists as [N, A] whenever shape[0] == N
    # (ambiguous iff A == N — same heuristic as the original module).  The
    # kernel consumes [A, N]; an input already shaped [A, N] is used directly.
    if dists_array.shape[0] == N:
        dists_t = dists_array.T                       # [A, N]
    else:
        dists_t = dists_array                         # already [A, N]
    A = dists_t.shape[0]
    dists_t = dists_t.astype(stream_dtype)

    embeds_f32 = embeds.astype(f32)
    embeds_t = embeds.T.astype(stream_dtype)          # [E, N]

    # Tiny precompute: fold the anchor gather, W1 and the 1/A mean into M^T.
    w_hidden = w_hidden.astype(f32)
    b_hidden = b_hidden.astype(f32)
    set_ids_emb = embeds_f32[anchor_set_id]           # [A, E]
    w1 = w_hidden[:, :E]                              # acts on messages
    w2 = w_hidden[:, E:]                              # acts on self feature
    m_t = ((w1 @ set_ids_emb.T) / jnp.float32(A)).astype(stream_dtype)  # [E, A]
    w2 = w2.astype(stream_dtype)                      # [E, E]
    b2d = b_hidden.reshape(E, 1)                      # [E, 1], f32

    # Node tiling: nodes on the lane axis.  tn is a multiple of 128 (or == N
    # when N <= 128); at least 2 grid steps whenever possible (v7x megacore);
    # capped at 8192 so double-buffered tiles stay ~6 MiB of VMEM.
    if N <= 128:
        tn = N
    else:
        half = _round_up(_cdiv(N, 2), 128)
        tn = min(_round_up(node_tile, 128), half, 8192)
        tn = max(tn, 128)
    grid = (_cdiv(N, tn),)   # ragged last block: OOB output columns dropped

    out_t = pl.pallas_call(
        _pnn_kernel,
        out_shape=jax.ShapeDtypeStruct((E, N), jnp.float32),
        grid_spec=pl.GridSpec(
            grid=grid,
            in_specs=[
                pl.BlockSpec((A, tn), lambda i: (0, i)),   # dists^T tile
                pl.BlockSpec((E, tn), lambda i: (0, i)),   # embeds^T tile
                pl.BlockSpec((E, A), lambda i: (0, 0)),    # M^T (resident)
                pl.BlockSpec((E, E), lambda i: (0, 0)),    # W2 (resident)
                pl.BlockSpec((E, 1), lambda i: (0, 0)),    # bias (resident)
            ],
            out_specs=pl.BlockSpec((E, tn), lambda i: (0, i)),
        ),
        compiler_params=pltpu.CompilerParams(
            dimension_semantics=("parallel",)),
    )(dists_t, embeds_t, m_t, w2, b2d)

    return out_t.T if transpose_output else out_t


def _reference(embeds, anchor_set_id, dists_array, w_hidden, b_hidden):
    """Pure-JAX replica of the original PyTorch forward (3-D path)."""
    N, E = embeds.shape
    d = dists_array.astype(jnp.float32)
    if d.shape[0] != N:
        d = d.T
    set_ids_emb = embeds[anchor_set_id]
    messages = set_ids_emb[None, :, :] * d[:, :, None]
    self_feat = jnp.broadcast_to(embeds[:, None, :], messages.shape)
    cat = jnp.concatenate([messages, self_feat], axis=-1)
    h = cat @ w_hidden.T + b_hidden
    return h.mean(axis=1)


if __name__ == "__main__":
    E, A = 32, 32
    key_a, key_b = jax.random.split(jax.random.PRNGKey(0), 2)

    def make_inputs(key, n):
        k1, k2, k3, k4, k5 = jax.random.split(key, 5)
        embeds = jax.random.normal(k1, (n, E), dtype=jnp.float32)
        dists = jax.random.uniform(k2, (n, A), dtype=jnp.float32)
        anchor = jax.random.randint(k3, (A,), 0, n)
        bound = 1.0 / jnp.sqrt(2.0 * E)
        w = jax.random.uniform(k4, (E, 2 * E), minval=-bound, maxval=bound,
                               dtype=jnp.float32)
        b = jax.random.uniform(k5, (E,), minval=-bound, maxval=bound,
                               dtype=jnp.float32)
        return embeds, dists, anchor, w, b

    # 1) Small N (non-multiple of 8/128): single full-width block.
    embeds, dists, anchor, w, b = make_inputs(key_a, 100)
    ref = _reference(embeds, anchor, dists, w, b)
    out = jax.block_until_ready(pnn_layer_forward(embeds, anchor, dists, w, b))
    assert out.shape == (100, E)
    assert jnp.allclose(out, ref, atol=1e-4, rtol=1e-4)

    # 1b) dists supplied as [A, N]: consumed directly, no wrapper transpose.
    out_tin = jax.block_until_ready(
        pnn_layer_forward(embeds, anchor, dists.T, w, b))
    assert jnp.allclose(out_tin, ref, atol=1e-4, rtol=1e-4)

    # 2) Larger N: multi-step grid with a ragged final block (no padding).
    embeds2, dists2, anchor2, w2_, b2_ = make_inputs(key_b, 1000)
    ref2 = _reference(embeds2, anchor2, dists2, w2_, b2_)
    out2 = jax.block_until_ready(
        pnn_layer_forward(embeds2, anchor2, dists2, w2_, b2_))      # tn=512, 2 steps
    assert jnp.allclose(out2, ref2, atol=1e-4, rtol=1e-4)
    out3 = jax.block_until_ready(
        pnn_layer_forward(embeds2, anchor2, dists2, w2_, b2_,
                          node_tile=256))                           # tn=256, 4 steps
    assert jnp.allclose(out3, ref2, atol=1e-4, rtol=1e-4)

    # 3) Opt-in bf16 streaming (f32 accumulation): looser tolerance.
    out_bf = jax.block_until_ready(
        pnn_layer_forward(embeds2, anchor2, dists2, w2_, b2_,
                          compute_dtype=jnp.bfloat16))
    assert jnp.allclose(out_bf, ref2, atol=5e-2, rtol=5e-2)

    print("KERNEL_OK")
</pallas_src>

<mosaic_0001>
module attributes {stable_mosaic.version = 11 : i64} {
  func.func @_pnn_kernel(%arg0: i32, %arg1: memref<32x100xf32, #tpu.memory_space<vmem>>, %arg2: memref<32x100xf32, #tpu.memory_space<vmem>>, %arg3: memref<32x32xf32, #tpu.memory_space<vmem>>, %arg4: memref<32x32xf32, #tpu.memory_space<vmem>>, %arg5: memref<32x1xf32, #tpu.memory_space<vmem>>, %arg6: memref<32x100xf32, #tpu.memory_space<vmem>>) attributes {dimension_semantics = [#tpu.dimension_semantics<parallel>], iteration_bounds = array<i64: 1>, scalar_prefetch = 0 : i64, scratch_operands = 0 : i64, tpu.core_type = #tpu.core_type<tc>, window_params = [{transform_indices = @transform_0, window_bounds = array<i64: 32, 100>}, {transform_indices = @transform_1, window_bounds = array<i64: 32, 100>}, {pipeline_mode = #tpu.pipeline_mode<synchronous>, transform_indices = @transform_2, window_bounds = array<i64: 32, 32>}, {pipeline_mode = #tpu.pipeline_mode<synchronous>, transform_indices = @transform_3, window_bounds = array<i64: 32, 32>}, {pipeline_mode = #tpu.pipeline_mode<synchronous>, transform_indices = @transform_4, window_bounds = array<i64: 32, 1>}, {transform_indices = @transform_5, window_bounds = array<i64: 32, 100>}]} {
    %c0 = arith.constant 0 : index
    %c0_0 = arith.constant 0 : index
    %0 = vector.load %arg3[%c0, %c0_0] : memref<32x32xf32, #tpu.memory_space<vmem>>, vector<32x32xf32>
    %c0_1 = arith.constant 0 : index
    %c0_2 = arith.constant 0 : index
    %1 = vector.load %arg1[%c0_1, %c0_2] : memref<32x100xf32, #tpu.memory_space<vmem>>, vector<32x100xf32>
    %cst = arith.constant dense<0.000000e+00> : vector<32x100xf32>
    %2 = tpu.matmul %0, %1, %cst {dimension_numbers = #tpu.dot_dimension_numbers<[1], [0], [0], [1], [0, 0, 1, 1], [], []>} : vector<32x32xf32>, vector<32x100xf32>, vector<32x100xf32> -> vector<32x100xf32>
    %c0_3 = arith.constant 0 : index
    %c0_4 = arith.constant 0 : index
    %3 = vector.load %arg4[%c0_3, %c0_4] : memref<32x32xf32, #tpu.memory_space<vmem>>, vector<32x32xf32>
    %c0_5 = arith.constant 0 : index
    %c0_6 = arith.constant 0 : index
    %4 = vector.load %arg2[%c0_5, %c0_6] : memref<32x100xf32, #tpu.memory_space<vmem>>, vector<32x100xf32>
    %cst_7 = arith.constant dense<0.000000e+00> : vector<32x100xf32>
    %5 = tpu.matmul %3, %4, %cst_7 {dimension_numbers = #tpu.dot_dimension_numbers<[1], [0], [0], [1], [0, 0, 1, 1], [], []>} : vector<32x32xf32>, vector<32x100xf32>, vector<32x100xf32> -> vector<32x100xf32>
    %6 = arith.addf %2, %5 : vector<32x100xf32>
    %c0_8 = arith.constant 0 : index
    %c0_9 = arith.constant 0 : index
    %7 = vector.load %arg5[%c0_8, %c0_9] : memref<32x1xf32, #tpu.memory_space<vmem>>, vector<32x1xf32>
    %8 = vector.broadcast %7 : vector<32x1xf32> to vector<32x100xf32>
    %9 = arith.addf %6, %8 : vector<32x100xf32>
    %c0_10 = arith.constant 0 : index
    %c0_11 = arith.constant 0 : index
    %10 = vector.load %arg6[%c0_10, %c0_11] : memref<32x100xf32, #tpu.memory_space<vmem>>, vector<32x100xf32>
    tpu.vector_store %arg6[%c0_10, %c0_11], %9 {strides = array<i32>} : memref<32x100xf32, #tpu.memory_space<vmem>>, vector<32x100xf32>,
    return
  }
  func.func @transform_0(%arg0: i32) -> (i32, i32) {
    %c0_i32 = arith.constant 0 : i32
    %c0_i32_0 = arith.constant 0 : i32
    return %c0_i32, %arg0 : i32, i32
  }
  func.func @transform_1(%arg0: i32) -> (i32, i32) {
    %c0_i32 = arith.constant 0 : i32
    %c0_i32_0 = arith.constant 0 : i32
    return %c0_i32, %arg0 : i32, i32
  }
  func.func @transform_2(%arg0: i32) -> (i32, i32) {
    %c0_i32 = arith.constant 0 : i32
    %c0_i32_0 = arith.constant 0 : i32
    %c0_i32_1 = arith.constant 0 : i32
    return %c0_i32, %c0_i32_0 : i32, i32
  }
  func.func @transform_3(%arg0: i32) -> (i32, i32) {
    %c0_i32 = arith.constant 0 : i32
    %c0_i32_0 = arith.constant 0 : i32
    %c0_i32_1 = arith.constant 0 : i32
    return %c0_i32, %c0_i32_0 : i32, i32
  }
  func.func @transform_4(%arg0: i32) -> (i32, i32) {
    %c0_i32 = arith.constant 0 : i32
    %c0_i32_0 = arith.constant 0 : i32
    %c0_i32_1 = arith.constant 0 : i32
    return %c0_i32, %c0_i32_0 : i32, i32
  }
  func.func @transform_5(%arg0: i32) -> (i32, i32) {
    %c0_i32 = arith.constant 0 : i32
    %c0_i32_0 = arith.constant 0 : i32
    return %c0_i32, %arg0 : i32, i32
  }
}

</mosaic_0001>

<bundles_post_ra>
// kernel: tpu_custom_call.1
= control target key start
LH: loop header
LB: loop body
LE: loop exit
PB: predicated region body
PF: predicated region fallthrough
CT: control target
= control target key end

     0   :  { %10 = vsyncpa [#allocation3], 0  ;;  %s639_s0 = inlined_call_operand.vmem [shape: f32[32,100], index: 0, kind: input, shape index: {}]   ;;  %s640_s1 = inlined_call_operand.hbm [shape: f32[32,100], index: 1, kind: input, shape index: {}]   ;;  %s641_s2 = inlined_call_operand.hbm [shape: f32[32,32], index: 2, kind: input, shape index: {}]   ;;  %s642_s3 = inlined_call_operand.hbm [shape: f32[32,32], index: 3, kind: input, shape index: {}]   ;;  %s643_s4 = inlined_call_operand.vmem [shape: f32[32,1], index: 4, kind: input, shape index: {}]   ;;  %s644_s5 = inlined_call_operand.hbm [shape: f32[32,100], index: 5, kind: output, shape index: {}]  }
   0x1   :  { %11 = vsyncpa [#allocation6], 0 }
   0x2   :  { %12 = vsyncpa [#allocation4], 0  ;;  %s499_s18 = smov [#allocation5]   ;;  %s500_s20 = smov [#allocation2]  }
   0x3   :  { %s32_s19 = sshll.u32 %s499_s18, 4  ;;  %s20_s21 = sshll.u32 %s500_s20, 4  ;;  %s33_s19 = int_to_ptr.vmem [resolvable:$true] %s32_s19  ;;  %s536_s21 = int_to_ptr.vmem [resolvable:$true] %s20_s21 }
   0x4   :  { %s405_s24 = scalar_lea.hbm %s641_s2, 512 }
   0x5   :  { %p406_p0 = scmp.ne.s32.totalorder %s641_s2, %s405_s24  ;;  %p409_p1 = scmp.lt.u32.totalorder %s405_s24, %s641_s2 }
   0x7   :  { %p411_p2 = pnand %p409_p1, %p406_p0 }
   0x9   :  { %414 = shalt.err (!%p411_p2)
}
   0xa   :  { %s415_s29 = scalar_lea.vmem %s33_s19, 512  ;;  %p420_p4 = scmp.lt.s32.totalorder %s33_s19, %s33_s19 }
   0xb   :  { %p416_p3 = scmp.ne.s32.totalorder %s33_s19, %s415_s29  ;;  %p421_p5 = scmp.lt.s32.totalorder %s415_s29, %s415_s29 }
   0xd   :  { %p422_p6 = por %p421_p5, %p420_p4 }
   0xf   :  { %p423_p7 = pnand %p422_p6, %p416_p3 }
  0x11   :  { %426 = shalt.err (!%p423_p7)
}
  0x12   :  { %s501_s30 = smov 128   ;;  %s502_s6 = smov 8  }
  0x13   :  { %38 = dma.hbm_to_vmem [thread:$0]  %s641_s2, 512, %s33_s19, [#allocation6], %s501_s30, %s501_s30, %s502_s6  }
  0x14   :  { %s427_s11 = scalar_lea.hbm %s640_s1, 512 }
  0x15   :  { %p428_p8 = scmp.ne.s32.totalorder %s640_s1, %s427_s11  ;;  %p431_p9 = scmp.lt.u32.totalorder %s427_s11, %s640_s1 }
  0x17   :  { %p433_p10 = pnand %p431_p9, %p428_p8 }
  0x19   :  { %436 = shalt.err (!%p433_p10)
}
  0x1a   :  { %s437_s16 = scalar_lea.vmem %s536_s21, 512  ;;  %p442_p12 = scmp.lt.s32.totalorder %s536_s21, %s536_s21 }
  0x1b   :  { %p438_p11 = scmp.ne.s32.totalorder %s536_s21, %s437_s16  ;;  %p443_p13 = scmp.lt.s32.totalorder %s437_s16, %s437_s16 }
  0x1d   :  { %p444_p0 = por %p443_p13, %p442_p12 }
  0x1f   :  { %p445_p1 = pnand %p444_p0, %p438_p11 }
  0x21   :  { %448 = shalt.err (!%p445_p1)
}
  0x22   :  { %26 = dma.hbm_to_vmem [thread:$0]  %s640_s1, 512, %s536_s21, [#allocation3], %s501_s30, %s501_s30, %s502_s6  }
  0x23   :  { %s503_s18 = smov [#allocation7]   ;;  %s449_s23 = scalar_lea.hbm %s642_s3, 512 }
  0x24   :  { %s44_s19 = sshll.u32 %s503_s18, 4  ;;  %p450_p2 = scmp.ne.s32.totalorder %s642_s3, %s449_s23  ;;  %s45_s19 = int_to_ptr.vmem [resolvable:$true] %s44_s19 }
  0x25   :  { %p453_p3 = scmp.lt.u32.totalorder %s449_s23, %s642_s3 }
  0x27   :  { %p455_p4 = pnand %p453_p3, %p450_p2 }
  0x29   :  { %458 = shalt.err (!%p455_p4)
}
  0x2a   :  { %s459_s28 = scalar_lea.vmem %s45_s19, 512  ;;  %p464_p6 = scmp.lt.s32.totalorder %s45_s19, %s45_s19 }
  0x2b   :  { %p460_p5 = scmp.ne.s32.totalorder %s45_s19, %s459_s28  ;;  %p465_p7 = scmp.lt.s32.totalorder %s459_s28, %s459_s28 }
  0x2d   :  { %p466_p8 = por %p465_p7, %p464_p6 }
  0x2f   :  { %p467_p9 = pnand %p466_p8, %p460_p5 }
  0x31   :  { %470 = shalt.err (!%p467_p9)
}
  0x32   :  { %50 = dma.hbm_to_vmem [thread:$0]  %s642_s3, 512, %s45_s19, [#allocation6], %s501_s30, %s501_s30, %s502_s6  }
  0x33   :  { %493 = dma.done.wait [#allocation3], 512  }
  0x34   :  { %494 = vsyncadd [#allocation3], 4294966784 }
  0x35   :  { %495 = dma.done.wait [#allocation6], 1024  }
  0x36   :  { %496 = vsyncadd [#allocation6], 4294966272  ;;  %v504_v0 = vmov 0   ;;  %v74_v1 = vld [vmem:[#allocation2] sm:$0xff]  ;;  %v75_v2 = vld [vmem:[#allocation2 + $0x8] sm:$0xff]  ;;  %vm78_vm0 = vcmask 261120  }
  0x37   :  { %403 = vset.pattern.permute.xlu0 %v504_v0  ;;  %404 = vset.pattern.permute.xlu1 %v504_v0  ;;  %v66_v3 = vld [vmem:[%s639_s0] sm:$0xff]  ;;  %v376_v4 = vpack.c.bf16 %v75_v2, %v74_v1  ;;  %v67_v5 = vld [vmem:[%s639_s0 + $0x8] sm:$0xff]  ;;  %v76_v6 = vld [vmem:[#allocation2 + $0x10] sm:$0xff]  ;;  %vm301_vm1 = vcmask 818176  }
  0x38   :  { %v77_v7 = vld [vmem:[#allocation2 + $0x18] sm:$0xff]  ;;  %v384_v8 = vpack.c.bf16 %v67_v5, %v66_v3  ;;  %v68_v10 = vld [vmem:[%s639_s0 + $0x10] sm:$0xff]  ;;  %v70_v12 = vld [vmem:[#allocation7] sm:$0xff] }
  0x39   :  { %v380_v9 = vpack.c.bf16 %v77_v7, %v76_v6  ;;  %v69_v11 = vld [vmem:[%s639_s0 + $0x18] sm:$0xff]  ;;  %377 = vmatprep.subr.bf16.mxu1 %v376_v4  ;;  %356 = vmatprep.mubr.msk.f32.mxu1 %vm78_vm0, %v70_v12  ;;  %v62_v14 = vld [vmem:[#allocation5] sm:$0xff]  ;;  %v275_v16 = vld [vmem:[%s643_s4 + $0x10] sm:$0xff] }
  0x3a   :  { %v388_v13 = vpack.c.bf16 %v69_v11, %v68_v10  ;;  %385 = vmatprep.subr.bf16.mxu0 %v384_v8  ;;  %379 = vmatpush3.bf16.msra.mxu1 %v376_v4  ;;  %v273_v15 = vld [vmem:[%s643_s4] sm:$0xff]  ;;  %v71_v17 = vld [vmem:[#allocation7 + $0x8] sm:$0xff]  ;;  %v72_v20 = vld [vmem:[#allocation7 + $0x10] sm:$0xff] }
  0x3b   :  { %387 = vmatpush3.bf16.msra.mxu0 %v384_v8  ;;  %381 = vmatprep.subr.bf16.mxu1 %v380_v9  ;;  %v274_v18 = vld [vmem:[%s643_s4 + $0x8] sm:$0xff]  ;;  %v64_v21 = vld [vmem:[#allocation5 + $0x10] sm:$0xff]  ;;  %v276_v22 = vld [vmem:[%s643_s4 + $0x18] sm:$0xff]  ;;  %s505_s4 = smov [#allocation8]  }
  0x3c   :  { %389 = vmatprep.subr.bf16.mxu0 %v388_v13  ;;  %370 = vmatprep.mubr.msk.f32.mxu0 %vm78_vm0, %v62_v14  ;;  %v63_v19 = vld [vmem:[#allocation5 + $0x8] sm:$0xff]  ;;  %v73_v23 = vld [vmem:[#allocation7 + $0x18] sm:$0xff]  ;;  %s311_s19 = sshll.u32 %s505_s4, 4  ;;  %s312_s19 = int_to_ptr.vmem [resolvable:$true] %s311_s19 }
  0x3d   :  { %279 = vperm.xlu0 %403, %v273_v15   ;;  %289 = vperm.xlu1 %404, %v275_v16   ;;  %v65_v24 = vld [vmem:[#allocation5 + $0x18] sm:$0xff]  ;;  %s471_s20 = scalar_lea.vmem %s312_s19, 512  ;;  %p476_p11 = scmp.lt.s32.totalorder %s312_s19, %s312_s19 }
  0x3e   :  { %383 = vmatpush3.bf16.msra.mxu1 %v380_v9  ;;  %p472_p10 = scmp.ne.s32.totalorder %s312_s19, %s471_s20  ;;  %p477_p12 = scmp.lt.s32.totalorder %s471_s20, %s471_s20 }
  0x3f   :  { %391 = vmatpush3.bf16.msra.mxu0 %v388_v13 }
  0x40   :  { %p478_p13 = por %p477_p12, %p476_p11 }
  0x41   :  { %357 = vmatmul.mubr.msk.f32.vlgmr.msra.gmra.mrb[0].mxu1 %vm78_vm0, %v71_v17  ;;  %284 = vperm.xlu0 %403, %v274_v18  }
  0x42   :  { %371 = vmatmul.mubr.msk.f32.vlgmr.msra.gmra.mrb[0].mxu0 %vm78_vm0, %v63_v19  ;;  %359 = vmatprep.mubr.msk.f32.mxu1 %vm78_vm0, %v72_v20  ;;  %p479_p0 = pnand %p478_p13, %p472_p10 }
  0x43   :  { %373 = vmatprep.mubr.msk.f32.mxu0 %vm78_vm0, %v64_v21  ;;  %294 = vperm.xlu1 %404, %v276_v22  }
  0x45   :  { %360 = vmatmul.mubr.msk.f32.gmra.mrb[2].mxu1 %vm78_vm0, %v73_v23 }
  0x46   :  { %374 = vmatmul.mubr.msk.f32.gmra.mrb[2].mxu0 %vm78_vm0, %v65_v24 }
  0xbc   :  { %v280_v25 = vpop.permute.xlu0 %279  ;;  %v290_v26 = vpop.permute.xlu1 %289 }
  0xc0   :  { %v285_v28 = vpop.permute.xlu0 %284 }
  0xc2   :  { %v295_v41 = vpop.permute.xlu1 %294 }
 0x114   :  { %v358_v27 = vpop.f32.mrb[0].mxu1 }
 0x115   :  { %v372_v29 = vpop.f32.mrb[0].mxu0  ;;  %v157_v30 = vpop.f32.mrb[1].mxu1 }
 0x116   :  { %v260_v31 = vadd.f32 %v372_v29, %v358_v27  ;;  %v254_v32 = vpop.f32.mrb[1].mxu0 }
 0x117   :  { %v255_v33 = vadd.f32 %v254_v32, %v157_v30 }
 0x118   :  { %v298_v34 = vadd.f32 %v285_v28, %v260_v31  ;;  %v361_v35 = vpop.f32.mrb[2].mxu1 }
 0x119   :  { %v297_v36 = vadd.f32 %v280_v25, %v255_v33  ;;  %v375_v37 = vpop.f32.mrb[2].mxu0  ;;  %v167_v38 = vpop.f32.mrb[3].mxu1 }
 0x11a   :  { %303 = vst.msk [vmem:[#allocation8 + $0x8] sm:$0xff] %vm301_vm1, %v298_v34  ;;  %v270_v39 = vadd.f32 %v375_v37, %v361_v35  ;;  %v264_v40 = vpop.f32.mrb[3].mxu0 }
 0x11b   :  { %302 = vst.msk [vmem:[#allocation8] sm:$0xff] %vm301_vm1, %v297_v36  ;;  %v265_v42 = vadd.f32 %v264_v40, %v167_v38 }
 0x11c   :  { %v300_v43 = vadd.f32 %v295_v41, %v270_v39 }
 0x11d   :  { %v299_v44 = vadd.f32 %v290_v26, %v265_v42 }
 0x11e   :  { %305 = vst.msk [vmem:[#allocation8 + $0x18] sm:$0xff] %vm301_vm1, %v300_v43 }
 0x11f   :  { %304 = vst.msk [vmem:[#allocation8 + $0x10] sm:$0xff] %vm301_vm1, %v299_v44 }
 0x120   :  { %482 = shalt.err (!%p479_p0)
}
 0x121   :  { %s483_s24 = scalar_lea.hbm %s644_s5, 512 }
 0x122   :  { %p484_p1 = scmp.ne.s32.totalorder %s644_s5, %s483_s24  ;;  %p487_p2 = scmp.lt.u32.totalorder %s483_s24, %s644_s5 }
 0x124   :  { %p489_p3 = pnand %p487_p2, %p484_p1 }
 0x126   :  { %492 = shalt.err (!%p489_p3)
}
 0x127   :  { %317 = dma.vmem_to_hbm [thread:$0]  %s312_s19, 512, %s644_s5, [#allocation4], %s501_s30, %s501_s30, %s502_s6  }
 0x128   :  { %497 = dma.done.wait [#allocation4], 512  }
 0x129   :  { %498 = vsyncadd [#allocation4], 4294966784 }
 0x12a   :  { %321 = vsyncpa [#allocation3], 1 }
 0x12b   :  { %322 = vsyncpa [#allocation6], 1 }
 0x12c   :  { %323 = vsyncpa [#allocation4], 1 }

</bundles_post_ra>
